<compile_context>
chip_gen: v7x
topology: tpu7x:2x2x1
jax: 0.10.0
libtpu: 0.0.40
codegen_flags: <defaults>
</compile_context>

<pallas_src>
import functools

import jax
import jax.numpy as jnp
from jax import lax
from jax.experimental import pallas as pl
from jax.experimental.pallas import tpu as pltpu


def _round_up(v, m):
    return ((v + m - 1) // m) * m


def _vmem_capacity_bytes():
    try:
        return int(pltpu.get_tpu_info().vmem_capacity_bytes)
    except Exception:
        return 64 << 20  # conservative: v7x per-TensorCore VMEM


def _auto_tiles(M, N, vmem_capacity):
    # bf16 tile intensity ~ tm*tn/(tm+tn) flop/byte.  (512, 1024) -> ~341,
    # clears v5e (~240) and v7x (~310) and fits v7x's 64 MiB VMEM;
    # (1024, 2048) -> ~683, clears v6e (~650) on 128 MiB-VMEM chips.
    if vmem_capacity >= (100 << 20) and M >= 1024 and N >= 2048:
        return 1024, 2048, 512
    return 512, 1024, 512


def _lora_linear_kernel(x_ref, w_ref, b_ref, a_ref, bmat_ref, o_ref, *scratch,
                        acc_in_output, share_h):
    # x:(tm,tk)  w:(tn,tk)  b:(1,tn)  a:(r,Kp) resident  bmat:(tn,r)  o:(tm,tn)
    if acc_in_output:
        (h_ref,) = scratch
        acc_ref = o_ref          # f32 output tile doubles as the accumulator
    else:
        acc_ref, h_ref = scratch

    j = pl.program_id(1)
    k = pl.program_id(2)
    tk = x_ref.shape[1]

    @pl.when(k == 0)
    def _():
        acc_ref[...] = jnp.zeros_like(acc_ref)

    h_init = jnp.logical_and(j == 0, k == 0) if share_h else (k == 0)

    @pl.when(h_init)
    def _():
        h_ref[...] = jnp.zeros_like(h_ref)

    x = x_ref[...]

    # Base path: x @ W^T — transpose folded into the contraction dims
    # (no W^T materialization in HBM).
    acc_ref[...] += lax.dot_general(
        x, w_ref[...], (((1,), (1,)), ((), ())),
        preferred_element_type=jnp.float32)

    # LoRA hidden: x @ A^T over the same K reduction.  A is fully resident in
    # VMEM; slice the current K chunk in-kernel (no per-k A DMA).
    def _accum_hidden():
        a_blk = a_ref[:, pl.ds(pl.multiple_of(k * tk, tk), tk)]
        h_ref[...] += lax.dot_general(
            x, a_blk, (((1,), (1,)), ((), ())),
            preferred_element_type=jnp.float32)

    if share_h:
        # h depends only on (i, k); build it once at j == 0 and reuse.
        pl.when(j == 0)(_accum_hidden)
    else:
        _accum_hidden()

    @pl.when(k == pl.num_programs(2) - 1)
    def _():
        # alpha/r is already folded into bmat (lora_B) in the wrapper.
        h = h_ref[...].astype(bmat_ref.dtype)
        lora = lax.dot_general(
            h, bmat_ref[...], (((1,), (1,)), ((), ())),
            preferred_element_type=jnp.float32)
        o_ref[...] = (acc_ref[...] + b_ref[...] + lora).astype(o_ref.dtype)


def lora_linear(x, W, b, A, B, *, alpha=16.0, tm=None, tn=None, tk=None,
                compute_dtype=jnp.bfloat16, vmem_limit_bytes=None,
                w_buffer_count=None):
    """x: (M, in); W: (out, in); b: (out,); A: (r, in); B: (out, r)."""
    M, K = x.shape
    N, Kw = W.shape
    r, Ka = A.shape
    assert Kw == K and Ka == K and B.shape == (N, r) and b.shape == (N,)

    out_dtype = x.dtype
    scale = float(alpha) / float(r)

    # Fold alpha/r into lora_B once (cheap (N, r) op) and cast MXU inputs.
    B = B * scale
    if compute_dtype is not None:
        x = x.astype(compute_dtype)
        W = W.astype(compute_dtype)
        A = A.astype(compute_dtype)
        B = B.astype(compute_dtype)

    vmem_capacity = _vmem_capacity_bytes()
    atm, atn, atk = _auto_tiles(M, N, vmem_capacity)
    tm = atm if tm is None else tm
    tn = atn if tn is None else tn
    tk = atk if tk is None else tk

    # Clamp tiles to the (padded) problem dims; keep (8, 128) alignment.
    tm = min(tm, _round_up(M, 8))
    tn = min(tn, _round_up(N, 128))
    tk = min(tk, _round_up(K, 128))
    Mp, Np, Kp = _round_up(M, tm), _round_up(N, tn), _round_up(K, tk)

    def pad2(arr, rows, cols):
        pr, pc = rows - arr.shape[0], cols - arr.shape[1]
        if pr or pc:
            arr = jnp.pad(arr, ((0, pr), (0, pc)))
        return arr

    xp = pad2(x, Mp, Kp)
    Wp = pad2(W, Np, Kp)
    Ap = pad2(A, r, Kp)
    Bp = pad2(B, Np, r)
    bp = pad2(b.astype(jnp.float32).reshape(1, N), 1, Np)   # bias stays f32

    grid = (Mp // tm, Np // tn, Kp // tk)
    gi, gj, _ = grid

    # Reuse the (tm, r) LoRA hidden across j only when the j axis stays on one
    # core; otherwise recompute it per j and let megacore shard j instead.
    share_h = (gi >= 2) or (gj == 1)
    dims = (("parallel", "arbitrary", "arbitrary") if share_h
            else ("parallel", "parallel", "arbitrary"))

    acc_in_output = jnp.dtype(out_dtype) == jnp.dtype(jnp.float32)

    scratch_shapes = []
    if not acc_in_output:
        scratch_shapes.append(pltpu.VMEM((tm, tn), jnp.float32))  # f32 acc
    scratch_shapes.append(pltpu.VMEM((tm, r), jnp.float32))       # LoRA hidden

    # Auto-raise the scoped-VMEM limit only when the chosen tiles need it.
    in_sz = jnp.dtype(xp.dtype).itemsize
    out_sz = jnp.dtype(out_dtype).itemsize
    vmem_need = (2 * tm * tk * in_sz + 2 * tn * tk * in_sz + 2 * tn * 4
                 + 2 * r * Kp * in_sz + 2 * tn * r * in_sz
                 + 2 * tm * tn * out_sz + tm * r * 4
                 + (0 if acc_in_output else tm * tn * 4))
    if vmem_limit_bytes is None and vmem_need > (12 << 20):
        vmem_limit_bytes = min(int(vmem_need) + (8 << 20),
                               vmem_capacity * 9 // 10)

    if w_buffer_count is not None and w_buffer_count > 2:
        # Opt-in deeper W buffering for small-M (decode-like, W-BW-bound) calls.
        w_spec = pl.BlockSpec((tn, tk), lambda i, j, k: (j, k),
                              pipeline_mode=pl.Buffered(w_buffer_count))
    else:
        w_spec = pl.BlockSpec((tn, tk), lambda i, j, k: (j, k))

    flops = 2 * M * N * K + 2 * M * K * r + 2 * M * r * N
    bytes_accessed = (
        sum(int(a.size) * a.dtype.itemsize for a in (xp, Wp, Ap, Bp, bp))
        + Mp * Np * out_sz)

    kernel = functools.partial(_lora_linear_kernel,
                               acc_in_output=acc_in_output, share_h=share_h)

    out = pl.pallas_call(
        kernel,
        out_shape=jax.ShapeDtypeStruct((Mp, Np), out_dtype),
        grid_spec=pltpu.PrefetchScalarGridSpec(
            num_scalar_prefetch=0,
            grid=grid,
            in_specs=[
                pl.BlockSpec((tm, tk), lambda i, j, k: (i, k)),   # x      (M, K)
                w_spec,                                           # W      (N, K)
                pl.BlockSpec((1, tn), lambda i, j, k: (0, j)),    # bias   (1, N)
                pl.BlockSpec((r, Kp), lambda i, j, k: (0, 0)),    # lora_A resident
                pl.BlockSpec((tn, r), lambda i, j, k: (j, 0)),    # lora_B (N, r)
            ],
            out_specs=pl.BlockSpec((tm, tn), lambda i, j, k: (i, j)),
            scratch_shapes=scratch_shapes,
        ),
        compiler_params=pltpu.CompilerParams(
            dimension_semantics=dims,
            vmem_limit_bytes=vmem_limit_bytes),
        cost_estimate=pl.CostEstimate(
            flops=flops, transcendentals=0, bytes_accessed=bytes_accessed),
    )(xp, Wp, bp, Ap, Bp)

    return out[:M, :N]


if __name__ == "__main__":
    key = jax.random.PRNGKey(0)
    k_x, k_w, k_b, k_a, k_bm = jax.random.split(key, 5)

    r, alpha = 8, 16.0

    def ref_fwd(x, W, b, A, B):
        return x @ W.T + b + (x @ A.T) @ B.T * (alpha / r)

    # --- Case 1: module-sized shapes (batch=8, in=32, out=64), f32 opt-in path.
    batch, in_features, out_features = 8, 32, 64
    x = jax.random.normal(k_x, (batch, in_features), dtype=jnp.float32)
    W = jax.random.normal(k_w, (out_features, in_features), dtype=jnp.float32) * 0.1
    bias = jax.random.normal(k_b, (out_features,), dtype=jnp.float32) * 0.1
    A = jax.random.normal(k_a, (r, in_features), dtype=jnp.float32) * 0.1
    B = jax.random.normal(k_bm, (out_features, r), dtype=jnp.float32) * 0.1

    out1 = jax.block_until_ready(
        lora_linear(x, W, bias, A, B, alpha=alpha, compute_dtype=jnp.float32))
    ref1 = ref_fwd(x, W, bias, A, B)
    assert jnp.allclose(out1, ref1, atol=2e-2, rtol=2e-2), "case1 (f32) mismatch"

    # --- Case 2: multi-tile (i, j, k) grid, default bf16 path, h reused across j.
    M2, K2, N2 = 64, 256, 384
    x2 = jax.random.normal(k_x, (M2, K2), dtype=jnp.float32)
    W2 = jax.random.normal(k_w, (N2, K2), dtype=jnp.float32) * 0.05
    b2 = jax.random.normal(k_b, (N2,), dtype=jnp.float32) * 0.1
    A2 = jax.random.normal(k_a, (r, K2), dtype=jnp.float32) * 0.05
    B2 = jax.random.normal(k_bm, (N2, r), dtype=jnp.float32) * 0.05

    out2 = jax.block_until_ready(
        lora_linear(x2, W2, b2, A2, B2, alpha=alpha, tm=32, tn=128, tk=128))
    ref2 = ref_fwd(x2, W2, b2, A2, B2)
    assert jnp.allclose(out2, ref2, atol=5e-2, rtol=5e-2), "case2 (bf16 tiled) mismatch"

    # --- Case 3: bf16 activations/output -> f32 scratch-accumulator path.
    x3 = x2.astype(jnp.bfloat16)
    out3 = jax.block_until_ready(
        lora_linear(x3, W2, b2, A2, B2, alpha=alpha, tm=32, tn=128, tk=128))
    ref3 = ref_fwd(x3.astype(jnp.float32), W2, b2, A2, B2)
    assert jnp.allclose(out3.astype(jnp.float32), ref3, atol=1e-1, rtol=1e-1), \
        "case3 (bf16 out) mismatch"

    # --- Case 4: decode-like small M, multiple j blocks -> per-j h recompute,
    #             j axis eligible for megacore sharding.
    x4 = jax.random.normal(k_x, (8, K2), dtype=jnp.float32)
    out4 = jax.block_until_ready(
        lora_linear(x4, W2, b2, A2, B2, alpha=alpha, tn=128, tk=128))
    ref4 = ref_fwd(x4, W2, b2, A2, B2)
    assert jnp.allclose(out4, ref4, atol=5e-2, rtol=5e-2), "case4 (small-M) mismatch"

    print("KERNEL_OK")
</pallas_src>

<mosaic_0001>
module attributes {stable_mosaic.version = 11 : i64} {
  func.func @_lora_linear_kernel(%arg0: i32, %arg1: i32, %arg2: i32, %arg3: memref<8x128xf32, #tpu.memory_space<vmem>>, %arg4: memref<128x128xf32, #tpu.memory_space<vmem>>, %arg5: memref<1x128xf32, #tpu.memory_space<vmem>>, %arg6: memref<8x128xf32, #tpu.memory_space<vmem>>, %arg7: memref<128x8xf32, #tpu.memory_space<vmem>>, %arg8: memref<8x128xf32, #tpu.memory_space<vmem>>, %arg9: memref<8x8xf32, #tpu.memory_space<vmem>>) attributes {dimension_semantics = [#tpu.dimension_semantics<parallel>, #tpu.dimension_semantics<arbitrary>, #tpu.dimension_semantics<arbitrary>], iteration_bounds = array<i64: 1, 1, 1>, scalar_prefetch = 0 : i64, scratch_operands = 1 : i64, tpu.core_type = #tpu.core_type<tc>, window_params = [{transform_indices = @transform_0, window_bounds = array<i64: 8, 128>}, {transform_indices = @transform_1, window_bounds = array<i64: 128, 128>}, {transform_indices = @transform_2, window_bounds = array<i64: 1, 128>}, {pipeline_mode = #tpu.pipeline_mode<synchronous>, transform_indices = @transform_3, window_bounds = array<i64: 8, 128>}, {transform_indices = @transform_4, window_bounds = array<i64: 128, 8>}, {transform_indices = @transform_5, window_bounds = array<i64: 8, 128>}]} {
    %c0_i32 = arith.constant 0 : i32
    %0 = arith.cmpi eq, %arg2, %c0_i32 : i32
    %1 = arith.extui %0 : i1 to i32
    %c0_i32_0 = arith.constant 0 : i32
    %2 = arith.cmpi ne, %1, %c0_i32_0 : i32
    scf.if %2 {
      %cst_15 = arith.constant 0.000000e+00 : f32
      %20 = vector.broadcast %cst_15 : f32 to vector<8x128xf32>
      %c0_16 = arith.constant 0 : index
      %c0_17 = arith.constant 0 : index
      %21 = vector.load %arg8[%c0_16, %c0_17] : memref<8x128xf32, #tpu.memory_space<vmem>>, vector<8x128xf32>
      tpu.vector_store %arg8[%c0_16, %c0_17], %20 {strides = array<i32>} : memref<8x128xf32, #tpu.memory_space<vmem>>, vector<8x128xf32>,
    } else {
    }
    %c0_i32_1 = arith.constant 0 : i32
    %3 = arith.cmpi eq, %arg1, %c0_i32_1 : i32
    %c0_i32_2 = arith.constant 0 : i32
    %4 = arith.cmpi eq, %arg2, %c0_i32_2 : i32
    %5 = arith.andi %3, %4 : i1
    %6 = arith.extui %5 : i1 to i32
    %c0_i32_3 = arith.constant 0 : i32
    %7 = arith.cmpi ne, %6, %c0_i32_3 : i32
    scf.if %7 {
      %cst_15 = arith.constant 0.000000e+00 : f32
      %20 = vector.broadcast %cst_15 : f32 to vector<8x8xf32>
      %c0_16 = arith.constant 0 : index
      %c0_17 = arith.constant 0 : index
      %21 = vector.load %arg9[%c0_16, %c0_17] : memref<8x8xf32, #tpu.memory_space<vmem>>, vector<8x8xf32>
      tpu.vector_store %arg9[%c0_16, %c0_17], %20 {strides = array<i32>} : memref<8x8xf32, #tpu.memory_space<vmem>>, vector<8x8xf32>,
    } else {
    }
    %c0 = arith.constant 0 : index
    %c0_4 = arith.constant 0 : index
    %8 = vector.load %arg3[%c0, %c0_4] : memref<8x128xf32, #tpu.memory_space<vmem>>, vector<8x128xf32>
    %c0_5 = arith.constant 0 : index
    %c0_6 = arith.constant 0 : index
    %9 = vector.load %arg8[%c0_5, %c0_6] : memref<8x128xf32, #tpu.memory_space<vmem>>, vector<8x128xf32>
    %c0_7 = arith.constant 0 : index
    %c0_8 = arith.constant 0 : index
    %10 = vector.load %arg4[%c0_7, %c0_8] : memref<128x128xf32, #tpu.memory_space<vmem>>, vector<128x128xf32>
    %cst = arith.constant dense<0.000000e+00> : vector<8x128xf32>
    %11 = tpu.matmul %8, %10, %cst {dimension_numbers = #tpu.dot_dimension_numbers<[1], [1], [0], [0], [0, 0, 1, 0], [], []>} : vector<8x128xf32>, vector<128x128xf32>, vector<8x128xf32> -> vector<8x128xf32>
    %12 = arith.addf %9, %11 : vector<8x128xf32>
    %c0_9 = arith.constant 0 : index
    %c0_10 = arith.constant 0 : index
    %13 = vector.load %arg8[%c0_9, %c0_10] : memref<8x128xf32, #tpu.memory_space<vmem>>, vector<8x128xf32>
    tpu.vector_store %arg8[%c0_9, %c0_10], %12 {strides = array<i32>} : memref<8x128xf32, #tpu.memory_space<vmem>>, vector<8x128xf32>,
    %c0_i32_11 = arith.constant 0 : i32
    %14 = arith.cmpi eq, %arg1, %c0_i32_11 : i32
    %15 = arith.extui %14 : i1 to i32
    %c0_i32_12 = arith.constant 0 : i32
    %16 = arith.cmpi ne, %15, %c0_i32_12 : i32
    scf.if %16 {
      %c128_i32 = arith.constant 128 : i32
      %20 = arith.muli %arg2, %c128_i32 : i32
      %21 = tpu.assume_multiple %20, 128 : i32
      %c0_15 = arith.constant 0 : index
      %22 = arith.index_cast %21 : i32 to index
      %23 = vector.load %arg6[%c0_15, %22] : memref<8x128xf32, #tpu.memory_space<vmem>>, vector<8x128xf32>
      %c0_16 = arith.constant 0 : index
      %c0_17 = arith.constant 0 : index
      %24 = vector.load %arg9[%c0_16, %c0_17] : memref<8x8xf32, #tpu.memory_space<vmem>>, vector<8x8xf32>
      %cst_18 = arith.constant dense<0.000000e+00> : vector<8x8xf32>
      %25 = tpu.matmul %8, %23, %cst_18 {dimension_numbers = #tpu.dot_dimension_numbers<[1], [1], [0], [0], [0, 0, 1, 0], [], []>} : vector<8x128xf32>, vector<8x128xf32>, vector<8x8xf32> -> vector<8x8xf32>
      %26 = arith.addf %24, %25 : vector<8x8xf32>
      %c0_19 = arith.constant 0 : index
      %c0_20 = arith.constant 0 : index
      %27 = vector.load %arg9[%c0_19, %c0_20] : memref<8x8xf32, #tpu.memory_space<vmem>>, vector<8x8xf32>
      tpu.vector_store %arg9[%c0_19, %c0_20], %26 {strides = array<i32>} : memref<8x8xf32, #tpu.memory_space<vmem>>, vector<8x8xf32>,
    } else {
    }
    %c0_i32_13 = arith.constant 0 : i32
    %17 = arith.cmpi eq, %arg2, %c0_i32_13 : i32
    %18 = arith.extui %17 : i1 to i32
    %c0_i32_14 = arith.constant 0 : i32
    %19 = arith.cmpi ne, %18, %c0_i32_14 : i32
    scf.if %19 {
      %c0_15 = arith.constant 0 : index
      %c0_16 = arith.constant 0 : index
      %20 = vector.load %arg9[%c0_15, %c0_16] : memref<8x8xf32, #tpu.memory_space<vmem>>, vector<8x8xf32>
      %c0_17 = arith.constant 0 : index
      %c0_18 = arith.constant 0 : index
      %21 = vector.load %arg7[%c0_17, %c0_18] : memref<128x8xf32, #tpu.memory_space<vmem>>, vector<128x8xf32>
      %cst_19 = arith.constant dense<0.000000e+00> : vector<8x128xf32>
      %22 = tpu.matmul %20, %21, %cst_19 {dimension_numbers = #tpu.dot_dimension_numbers<[1], [1], [0], [0], [0, 0, 1, 0], [], []>} : vector<8x8xf32>, vector<128x8xf32>, vector<8x128xf32> -> vector<8x128xf32>
      %c0_20 = arith.constant 0 : index
      %c0_21 = arith.constant 0 : index
      %23 = vector.load %arg8[%c0_20, %c0_21] : memref<8x128xf32, #tpu.memory_space<vmem>>, vector<8x128xf32>
      %c0_22 = arith.constant 0 : index
      %c0_23 = arith.constant 0 : index
      %24 = vector.load %arg5[%c0_22, %c0_23] : memref<1x128xf32, #tpu.memory_space<vmem>>, vector<1x128xf32>
      %25 = vector.broadcast %24 : vector<1x128xf32> to vector<8x128xf32>
      %26 = arith.addf %23, %25 : vector<8x128xf32>
      %27 = arith.addf %26, %22 : vector<8x128xf32>
      %c0_24 = arith.constant 0 : index
      %c0_25 = arith.constant 0 : index
      %28 = vector.load %arg8[%c0_24, %c0_25] : memref<8x128xf32, #tpu.memory_space<vmem>>, vector<8x128xf32>
      tpu.vector_store %arg8[%c0_24, %c0_25], %27 {strides = array<i32>} : memref<8x128xf32, #tpu.memory_space<vmem>>, vector<8x128xf32>,
    } else {
    }
    return
  }
  func.func @transform_0(%arg0: i32, %arg1: i32, %arg2: i32) -> (i32, i32) {
    %c0_i32 = arith.constant 0 : i32
    return %arg0, %arg2 : i32, i32
  }
  func.func @transform_1(%arg0: i32, %arg1: i32, %arg2: i32) -> (i32, i32) {
    %c0_i32 = arith.constant 0 : i32
    return %arg1, %arg2 : i32, i32
  }
  func.func @transform_2(%arg0: i32, %arg1: i32, %arg2: i32) -> (i32, i32) {
    %c0_i32 = arith.constant 0 : i32
    %c0_i32_0 = arith.constant 0 : i32
    return %c0_i32, %arg1 : i32, i32
  }
  func.func @transform_3(%arg0: i32, %arg1: i32, %arg2: i32) -> (i32, i32) {
    %c0_i32 = arith.constant 0 : i32
    %c0_i32_0 = arith.constant 0 : i32
    %c0_i32_1 = arith.constant 0 : i32
    return %c0_i32, %c0_i32_0 : i32, i32
  }
  func.func @transform_4(%arg0: i32, %arg1: i32, %arg2: i32) -> (i32, i32) {
    %c0_i32 = arith.constant 0 : i32
    %c0_i32_0 = arith.constant 0 : i32
    return %arg1, %c0_i32 : i32, i32
  }
  func.func @transform_5(%arg0: i32, %arg1: i32, %arg2: i32) -> (i32, i32) {
    %c0_i32 = arith.constant 0 : i32
    return %arg0, %arg1 : i32, i32
  }
}

</mosaic_0001>

<bundles_post_ra>
// kernel: tpu_custom_call.1
= control target key start
LH: loop header
LB: loop body
LE: loop exit
PB: predicated region body
PF: predicated region fallthrough
CT: control target
= control target key end

     0   :  { %10 = vsyncpa [#allocation4], 0  ;;  %s837_s0 = inlined_call_operand.vmem [shape: f32[8,128], index: 0, kind: input, shape index: {}]   ;;  %s838_s1 = inlined_call_operand.vmem [shape: f32[128,128], index: 1, kind: input, shape index: {}]   ;;  %s839_s2 = inlined_call_operand.vmem [shape: f32[1,128], index: 2, kind: input, shape index: {}]   ;;  %s840_s3 = inlined_call_operand.hbm [shape: f32[8,128], index: 3, kind: input, shape index: {}]   ;;  %s841_s4 = inlined_call_operand.vmem [shape: f32[128,8], index: 4, kind: input, shape index: {}]   ;;  %s842_s5 = inlined_call_operand.hbm [shape: f32[8,128], index: 5, kind: output, shape index: {}]  }
   0x1   :  { %11 = vsyncpa [#allocation5], 0  ;;  %s627_s18 = smov [#allocation3]   ;;  %s579_s22 = scalar_lea.hbm %s840_s3, 128 }
   0x2   :  { %s24_s19 = sshll.u32 %s627_s18, 4  ;;  %p580_p0 = scmp.ne.s32.totalorder %s840_s3, %s579_s22  ;;  %s25_s19 = int_to_ptr.vmem [resolvable:$true] %s24_s19 }
   0x3   :  { %p583_p1 = scmp.lt.u32.totalorder %s579_s22, %s840_s3 }
   0x5   :  { %p585_p2 = pnand %p583_p1, %p580_p0 }
   0x7   :  { %588 = shalt.err (!%p585_p2)
}
   0x8   :  { %s589_s27 = scalar_lea.vmem %s25_s19, 128  ;;  %p594_p4 = scmp.lt.s32.totalorder %s25_s19, %s25_s19 }
   0x9   :  { %p590_p3 = scmp.ne.s32.totalorder %s25_s19, %s589_s27  ;;  %p595_p5 = scmp.lt.s32.totalorder %s589_s27, %s589_s27 }
   0xb   :  { %p596_p6 = por %p595_p5, %p594_p4 }
   0xd   :  { %p597_p7 = pnand %p596_p6, %p590_p3 }
   0xf   :  { %600 = shalt.err (!%p597_p7)
}
  0x10   :  { %27 = dma.hbm_to_vmem [thread:$0]  %s840_s3, 128, %s25_s19, [#allocation4]  }
  0x11   :  { %623 = dma.done.wait [#allocation4], 128  }
  0x12   :  { %624 = vsyncadd [#allocation4], 4294967168  ;;  %vm43_vm0 = vcmask 64512   ;;  %v628_v0 = vmov 0.0|0.0   ;;  %vm629_vm1 = vmmov 0   ;;  %v630_v1 = vmov 0.0  }
  0x13   :  { %515 = vmatprep.subr.bf16.mxu1 %v628_v0  ;;  %472 = vmatprep.mubr.msk.f32.mxu1 %vm629_vm1, %v630_v1  ;;  %44 = vst.msk [vmem:[#allocation2] sm:$0xff] %vm43_vm0, %v630_v1  ;;  %v47_v2 = vld [vmem:[%s838_s1] sm:$0xff]  ;;  %v48_v3 = vld [vmem:[%s838_s1 + $0x8] sm:$0xff]  ;;  %v49_v5 = vld [vmem:[%s838_s1 + $0x10] sm:$0xff] }
  0x14   :  { %539 = vmatprep.subr.bf16.mxu0 %v628_v0  ;;  %512 = vmatprep.mubr.msk.f32.mxu0 %vm629_vm1, %v630_v1  ;;  %v516_v4 = vpack.c.bf16 %v48_v3, %v47_v2  ;;  %v50_v6 = vld [vmem:[%s838_s1 + $0x18] sm:$0xff]  ;;  %v221_v7 = vld [vmem:[%s841_s4] sm:$0xff]  ;;  %v222_v8 = vld [vmem:[%s841_s4 + $0x8] sm:$0xff] }
  0x15   :  { %vm703_vm2 = vmpackc.low %vm43_vm0, %vm43_vm0  ;;  %v519_v10 = vpack.c.bf16 %v50_v6, %v49_v5  ;;  %v540_v11 = vpack.c.bf16 %v222_v8, %v221_v7  ;;  %v223_v12 = vld [vmem:[%s841_s4 + $0x10] sm:$0xff]  ;;  %v224_v13 = vld [vmem:[%s841_s4 + $0x18] sm:$0xff] }
  0x16   :  { %517 = vmatpush3.bf16.xpose.msra.mxu1 %v516_v4  ;;  %v51_v14 = vld [vmem:[%s838_s1 + $0x20] sm:$0xff]  ;;  %v52_v15 = vld [vmem:[%s838_s1 + $0x28] sm:$0xff]  ;;  %v544_v16 = vpack.c.bf16 %v224_v13, %v223_v12  ;;  %v53_v20 = vld [vmem:[%s838_s1 + $0x30] sm:$0xff] }
  0x17   :  { %518 = vmatprep.subr.bf16.mxu1 %v628_v0  ;;  %542 = vmatpush3.bf16.xpose.msk.msra.mxu0 %vm703_vm2, %v540_v11  ;;  %v522_v17 = vpack.c.bf16 %v52_v15, %v51_v14  ;;  %v225_v18 = vld [vmem:[%s841_s4 + $0x20] sm:$0xff]  ;;  %v226_v19 = vld [vmem:[%s841_s4 + $0x28] sm:$0xff]  ;;  %v54_v21 = vld [vmem:[%s838_s1 + $0x38] sm:$0xff] }
  0x18   :  { %543 = vmatprep.subr.bf16.mxu0 %v628_v0  ;;  %v548_v22 = vpack.c.bf16 %v226_v19, %v225_v18  ;;  %v525_v23 = vpack.c.bf16 %v54_v21, %v53_v20  ;;  %v227_v24 = vld [vmem:[%s841_s4 + $0x30] sm:$0xff]  ;;  %v228_v25 = vld [vmem:[%s841_s4 + $0x38] sm:$0xff]  ;;  %v55_v26 = vld [vmem:[%s838_s1 + $0x40] sm:$0xff] }
  0x19   :  { %v56_v27 = vld [vmem:[%s838_s1 + $0x48] sm:$0xff]  ;;  %v552_v28 = vpack.c.bf16 %v228_v25, %v227_v24  ;;  %v229_v30 = vld [vmem:[%s841_s4 + $0x40] sm:$0xff]  ;;  %v57_v32 = vld [vmem:[%s838_s1 + $0x50] sm:$0xff] }
  0x1a   :  { %v528_v29 = vpack.c.bf16 %v56_v27, %v55_v26  ;;  %v230_v31 = vld [vmem:[%s841_s4 + $0x48] sm:$0xff]  ;;  %v58_v33 = vld [vmem:[%s838_s1 + $0x58] sm:$0xff]  ;;  %v231_v36 = vld [vmem:[%s841_s4 + $0x50] sm:$0xff] }
  0x1b   :  { %v556_v34 = vpack.c.bf16 %v230_v31, %v229_v30  ;;  %v531_v35 = vpack.c.bf16 %v58_v33, %v57_v32  ;;  %v232_v37 = vld [vmem:[%s841_s4 + $0x58] sm:$0xff]  ;;  %v59_v38 = vld [vmem:[%s838_s1 + $0x60] sm:$0xff]  ;;  %v60_v39 = vld [vmem:[%s838_s1 + $0x68] sm:$0xff] }
  0x1c   :  { %v560_v40 = vpack.c.bf16 %v232_v37, %v231_v36  ;;  %v534_v41 = vpack.c.bf16 %v60_v39, %v59_v38  ;;  %v61_v42 = vld [vmem:[%s838_s1 + $0x70] sm:$0xff]  ;;  %v62_v43 = vld [vmem:[%s838_s1 + $0x78] sm:$0xff]  ;;  %v45_v45 = vld [vmem:[%s837_s0] sm:$0xff] }
  0x1d   :  { %v537_v44 = vpack.c.bf16 %v62_v43, %v61_v42  ;;  %v142_v46 = vld [vmem:[#allocation3] sm:$0xff]  ;;  %v233_v47 = vld [vmem:[%s841_s4 + $0x60] sm:$0xff]  ;;  %v235_v50 = vld [vmem:[%s841_s4 + $0x70] sm:$0xff] }
  0x1e   :  { %520 = vmatpush3.bf16.xpose.msra.mxu1 %v519_v10  ;;  %v234_v48 = vld [vmem:[%s841_s4 + $0x68] sm:$0xff]  ;;  %v236_v51 = vld [vmem:[%s841_s4 + $0x78] sm:$0xff]  ;;  %v143_v55 = vld [vmem:[#allocation2] sm:$0xff]  ;;  %s631_s4 = smov [#allocation6]  }
  0x1f   :  { %521 = vmatprep.subr.bf16.mxu1 %v628_v0  ;;  %546 = vmatpush3.bf16.xpose.msk.msra.mxu0 %vm703_vm2, %v544_v16  ;;  %v564_v49 = vpack.c.bf16 %v234_v48, %v233_v47  ;;  %v568_v52 = vpack.c.bf16 %v236_v51, %v235_v50  ;;  %v403_v61 = vld [vmem:[%s839_s2] ss:$0 sm:$0xff]  ;;  %s376_s18 = sshll.u32 %s631_s4, 4  ;;  %s377_s18 = int_to_ptr.vmem [resolvable:$true] %s376_s18 }
  0x20   :  { %547 = vmatprep.subr.bf16.mxu0 %v628_v0  ;;  %s601_s19 = scalar_lea.vmem %s377_s18, 128  ;;  %p606_p9 = scmp.lt.s32.totalorder %s377_s18, %s377_s18 }
  0x21   :  { %p602_p8 = scmp.ne.s32.totalorder %s377_s18, %s601_s19  ;;  %p607_p10 = scmp.lt.s32.totalorder %s601_s19, %s601_s19 }
  0x23   :  { %p608_p11 = por %p607_p10, %p606_p9 }
  0x25   :  { %p609_p12 = pnand %p608_p11, %p602_p8 }
  0x26   :  { %523 = vmatpush3.bf16.xpose.msra.mxu1 %v522_v17 }
  0x27   :  { %524 = vmatprep.subr.bf16.mxu1 %v628_v0  ;;  %550 = vmatpush3.bf16.xpose.msk.msra.mxu0 %vm703_vm2, %v548_v22 }
  0x28   :  { %551 = vmatprep.subr.bf16.mxu0 %v628_v0 }
  0x2e   :  { %526 = vmatpush3.bf16.xpose.msra.mxu1 %v525_v23 }
  0x2f   :  { %527 = vmatprep.subr.bf16.mxu1 %v628_v0  ;;  %554 = vmatpush3.bf16.xpose.msk.msra.mxu0 %vm703_vm2, %v552_v28 }
  0x30   :  { %555 = vmatprep.subr.bf16.mxu0 %v628_v0 }
  0x36   :  { %529 = vmatpush3.bf16.xpose.msra.mxu1 %v528_v29 }
  0x37   :  { %530 = vmatprep.subr.bf16.mxu1 %v628_v0  ;;  %558 = vmatpush3.bf16.xpose.msk.msra.mxu0 %vm703_vm2, %v556_v34 }
  0x38   :  { %559 = vmatprep.subr.bf16.mxu0 %v628_v0 }
  0x3e   :  { %532 = vmatpush3.bf16.xpose.msra.mxu1 %v531_v35 }
  0x3f   :  { %533 = vmatprep.subr.bf16.mxu1 %v628_v0  ;;  %562 = vmatpush3.bf16.xpose.msk.msra.mxu0 %vm703_vm2, %v560_v40 }
  0x40   :  { %563 = vmatprep.subr.bf16.mxu0 %v628_v0 }
  0x46   :  { %535 = vmatpush3.bf16.xpose.msra.mxu1 %v534_v41 }
  0x47   :  { %536 = vmatprep.subr.bf16.mxu1 %v628_v0  ;;  %566 = vmatpush3.bf16.xpose.msk.msra.mxu0 %vm703_vm2, %v564_v49 }
  0x48   :  { %567 = vmatprep.subr.bf16.mxu0 %v628_v0 }
  0x4e   :  { %538 = vmatpush3.bf16.xpose.msra.mxu1 %v537_v44 }
  0x4f   :  { %475 = vmatprep.subr.mxu1 %v630_v1  ;;  %570 = vmatpush3.bf16.xpose.msk.msra.mxu0 %vm703_vm2, %v568_v52 }
  0x55   :  { %473 = vmatmul.mubr.f32.vlgmr.msra.gmra.mrb[0].mxu1 %v45_v45 }
  0x56   :  { %476 = vmatpush3.xpose.msra.mxu1 %v142_v46  ;;  %477 = vmatprep.mubr.msk.f32.mxu1 %vm629_vm1, %v630_v1 }
  0x59   :  { %478 = vmatmul.mubr.f32.vlgmr.msra.gmra.mrb[2].mxu1 %v45_v45 }
 0x128   :  { %v129_v53 = vpop.f32.mrb[0].mxu1 }
 0x129   :  { %v474_v54 = vpop.f32.mrb[1].mxu1 }
 0x12c   :  { %v210_v56 = vpop.f32.mrb[2].mxu1 }
 0x12d   :  { %v214_v57 = vadd.f32 %v210_v56, %v143_v55  ;;  %v479_v58 = vpop.f32.mrb[3].mxu1 }
 0x12f   :  { %216 = vst.msk [vmem:[#allocation2] sm:$0xff] %vm43_vm0, %v214_v57 }
 0x136   :  { %v220_v59 = vld [vmem:[#allocation2] sm:$0xff] }
 0x137   :  { %513 = vmatmul.mubr.msk.f32.vlgmr.msra.gmra.mrb[0].mxu0 %vm43_vm0, %v220_v59 }
 0x20a   :  { %v355_v60 = vpop.f32.mrb[0].mxu0 }
 0x20b   :  { %v572_v62 = vadd.f32 %v355_v60, %v129_v53  ;;  %v514_v63 = vpop.f32.mrb[1].mxu0 }
 0x20d   :  { %v573_v0 = vadd.f32 %v572_v62, %v403_v61 }
 0x20f   :  { %369 = vst [vmem:[#allocation6] sm:$0xff] %v573_v0 }
 0x210   :  { %612 = shalt.err (!%p609_p12)
}
 0x211   :  { %s613_s22 = scalar_lea.hbm %s842_s5, 128 }
 0x212   :  { %p614_p13 = scmp.ne.s32.totalorder %s842_s5, %s613_s22  ;;  %p617_p0 = scmp.lt.u32.totalorder %s613_s22, %s842_s5 }
 0x214   :  { %p619_p1 = pnand %p617_p0, %p614_p13 }
 0x216   :  { %622 = shalt.err (!%p619_p1)
}
 0x217   :  { %379 = dma.vmem_to_hbm [thread:$0]  %s377_s18, 128, %s842_s5, [#allocation5]  }
 0x218   :  { %625 = dma.done.wait [#allocation5], 128  }
 0x219   :  { %626 = vsyncadd [#allocation5], 4294967168 }
 0x21a   :  { %383 = vsyncpa [#allocation4], 1 }
 0x21b   :  { %384 = vsyncpa [#allocation5], 1 }

</bundles_post_ra>
